<compile_context>
chip_gen: v7x
topology: tpu7x:2x2x1
jax: 0.10.0
libtpu: 0.0.40
codegen_flags: <defaults>
</compile_context>

<pallas_src>
import functools

import jax
import jax.numpy as jnp
from jax.experimental import pallas as pl
from jax.experimental.pallas import tpu as pltpu


def _append_kernel(blk_ref, enc_hbm, cache_hbm, out_hbm, sem):
    """Scatter-append: out[t, blk*NU:(blk+1)*NU, :] = enc[t] for all unit types.

    blk_ref   : SMEM (1,) int32 scalar prefetch — row-block index (offset // n).
    enc_hbm   : (T, N*U, D) new encodings, left in HBM (memory_space=pl.ANY).
    cache_hbm : aliased cache operand; never read (aliasing only needs it to exist).
    out_hbm   : (T, C*U, D) output — same HBM buffer as the donated cache.
    sem       : (T,) DMA semaphores.
    """
    del cache_hbm
    t_count, nu, _ = enc_hbm.shape
    row = pl.multiple_of(blk_ref[0] * nu, nu)   # offset % n == 0 ⇒ row % NU == 0
    copies = []
    for t in range(t_count):                    # static, small T — all DMAs overlap
        cp = pltpu.make_async_copy(
            enc_hbm.at[t],
            out_hbm.at[t, pl.ds(row, nu), :],
            sem.at[t],
        )
        cp.start()
        copies.append(cp)
    for cp in copies:
        cp.wait()


@functools.partial(jax.jit, donate_argnums=(0,))
def append_vectors(cache, enc, block_idx):
    """In-place append: cache[:, blk*NU:(blk+1)*NU, :] = enc, for all unit types.

    cache     : (T, C*U, D) stacked, U-folded cache (donated, updated in place).
    enc       : (T, N*U, D) stacked new encodings.
    block_idx : scalar int, row-block index = offset // n (offset % n == 0).
    """
    T, CU, D = cache.shape
    block_idx = jnp.asarray(block_idx, dtype=jnp.int32).reshape((1,))

    return pl.pallas_call(
        _append_kernel,
        out_shape=jax.ShapeDtypeStruct((T, CU, D), cache.dtype),
        grid_spec=pltpu.PrefetchScalarGridSpec(
            num_scalar_prefetch=1,                   # block_idx lands in SMEM
            grid=(1,),                               # all unit types in one step
            in_specs=[
                pl.BlockSpec(memory_space=pl.ANY),   # enc stays in HBM (DMA src)
                pl.BlockSpec(memory_space=pl.ANY),   # aliased cache (never read)
            ],
            out_specs=pl.BlockSpec(memory_space=pl.ANY),  # DMA dst, aliases cache
            scratch_shapes=[pltpu.SemaphoreType.DMA((T,))],
        ),
        # operands are (block_idx, enc, cache) -> cache (index 2) aliases output 0
        input_output_aliases={2: 0},
    )(block_idx, enc, cache)


class SerializeResidualOp:
    """JAX/Pallas port of the tracing op's forward-pass semantics."""

    def __init__(self, max_cached: int, capacity: int):
        self.max_cached = max_cached
        self.capacity = capacity
        self.cached = 0
        self.initialized = False
        self.unit_types = None
        self.cache = None            # stacked, U-folded (T, C*U, D) cache buffer
        self.num_flushes = 0
        self._u = None
        self._d = None

    def _init(self, unit_type2encodings):
        # Mirrors build_space(): one vector store per unit type, fused into a
        # single stacked buffer so one kernel launch updates all of them.
        self.unit_types = list(unit_type2encodings.keys())
        shapes = {tuple(e.shape) for e in unit_type2encodings.values()}
        assert len(shapes) == 1, (
            "fused cache requires identical (n, u, d) shapes per unit type")
        _, u, d = next(iter(shapes))
        self._u, self._d = u, d
        enc0 = next(iter(unit_type2encodings.values()))
        T = len(self.unit_types)
        # U folded into the row axis -> lane/sublane-dense (C*U, D) slabs.
        self.cache = jnp.zeros((T, self.capacity * u, d), enc0.dtype)
        self.initialized = True

    def forward(self, unit_type2encodings):
        if not self.initialized:
            self._init(unit_type2encodings)

        flush = self.cached >= self.max_cached
        offset = self.cached
        n = next(iter(unit_type2encodings.values())).shape[0]

        # Guard the dynamic write (no runtime OOB check on TPU) and the
        # offset-multiple assumption used by the kernel.
        assert offset + n <= self.capacity, "cache capacity exceeded"
        assert offset % n == 0, "offset must be a multiple of the batch size"

        self.cached += n

        enc = jnp.stack(
            [unit_type2encodings[ut].reshape(n * self._u, self._d)
             for ut in self.unit_types], axis=0)
        # One fused, in-place, O(N*U*D)-traffic HBM->HBM append for all types.
        self.cache = append_vectors(self.cache, enc, offset // n)

        if flush:
            # TODO(synk): HDF5/disk serialization (Space.save_to_disk) has no
            # Pallas / device-side equivalent; only the counter reset is kept.
            self.num_flushes += 1
            self.cached = 0

        # Match the PyTorch op: forward() returns nothing — avoids the full
        # (C,U,D)-per-type copy that dominated HBM traffic in the prior version.
        return None

    def cache_view(self, unit_type):
        """Lazy per-unit-type view of the cache, shaped (capacity, u, d)."""
        i = self.unit_types.index(unit_type)
        return self.cache[i].reshape(self.capacity, self._u, self._d)


if __name__ == "__main__":
    key = jax.random.PRNGKey(0)

    # Small shapes implied by the module: encodings (n, u, d) per unit type.
    N, U, D = 2, 4, 128
    MAX_CACHED = 8
    CAPACITY = 16
    NUM_STEPS = 6

    op = SerializeResidualOp(max_cached=MAX_CACHED, capacity=CAPACITY)

    # Pure-JAX reference state for verification.
    ref_caches = {
        "mlp": jnp.zeros((CAPACITY, U, D), jnp.float32),
        "attn": jnp.zeros((CAPACITY, U, D), jnp.float32),
    }
    ref_cached = 0

    for step in range(NUM_STEPS):
        key, k1, k2 = jax.random.split(key, 3)
        batch = {
            "mlp": jax.random.normal(k1, (N, U, D), jnp.float32),
            "attn": jax.random.normal(k2, (N, U, D), jnp.float32),
        }

        op.forward(batch)

        # Reference semantics (same flush/offset logic, dynamic_update_slice).
        flush = ref_cached >= MAX_CACHED
        offset = ref_cached
        ref_cached += N
        for ut, enc in batch.items():
            ref_caches[ut] = jax.lax.dynamic_update_slice(
                ref_caches[ut], enc, (offset, 0, 0))
        if flush:
            ref_cached = 0

        for ut in batch:
            got = jax.block_until_ready(op.cache_view(ut))
            want = jax.block_until_ready(ref_caches[ut])
            assert jnp.allclose(got, want), f"mismatch at step {step} unit {ut}"

    assert op.cached == ref_cached
    assert op.num_flushes == 1
    print("KERNEL_OK")
</pallas_src>

<mosaic_0001>
module attributes {stable_mosaic.version = 11 : i64} {
  func.func @_append_kernel(%arg0: i32, %arg1: memref<1xi32, #tpu.memory_space<smem>>, %arg2: memref<2x8x128xf32, #tpu.memory_space<any>>, %arg3: memref<2x64x128xf32, #tpu.memory_space<any>>, %arg4: memref<2x64x128xf32, #tpu.memory_space<any>>, %arg5: memref<2x!tpu.dma_semaphore, #tpu.memory_space<semaphore_mem>>) attributes {dimension_semantics = [#tpu.dimension_semantics<arbitrary>], iteration_bounds = array<i64: 1>, scalar_prefetch = 1 : i64, scratch_operands = 1 : i64, tpu.core_type = #tpu.core_type<tc>, window_params = [{}, {}, {}]} {
    %c0 = arith.constant 0 : index
    %0 = memref.load %arg1[%c0] : memref<1xi32, #tpu.memory_space<smem>>
    %c8_i32 = arith.constant 8 : i32
    %1 = arith.muli %0, %c8_i32 : i32
    %2 = tpu.assume_multiple %1, 8 : i32
    %c0_i32 = arith.constant 0 : i32
    %c0_i32_0 = arith.constant 0 : i32
    %c0_i32_1 = arith.constant 0 : i32
    %c0_i32_2 = arith.constant 0 : i32
    %c0_i32_3 = arith.constant 0 : i32
    %3 = tpu.memref_slice %arg2[%c0_i32, %c0_i32_2, %c0_i32_3] : memref<2x8x128xf32, #tpu.memory_space<any>> -> memref<1x8x128xf32, #tpu.memory_space<any>>
    %4 = tpu.memref_squeeze %3 : memref<1x8x128xf32, #tpu.memory_space<any>> -> memref<8x128xf32, #tpu.memory_space<any>>
    %c0_i32_4 = arith.constant 0 : i32
    %5 = tpu.memref_slice %arg4[%c0_i32_0, %2, %c0_i32_4] : memref<2x64x128xf32, #tpu.memory_space<any>> -> memref<1x8x128xf32, #tpu.memory_space<any>>
    %6 = tpu.memref_squeeze %5 : memref<1x8x128xf32, #tpu.memory_space<any>> -> memref<8x128xf32, #tpu.memory_space<any>>
    %7 = tpu.memref_slice %arg5[%c0_i32_1] : memref<2x!tpu.dma_semaphore, #tpu.memory_space<semaphore_mem>> -> memref<1x!tpu.dma_semaphore, #tpu.memory_space<semaphore_mem>>
    %8 = tpu.memref_squeeze %7 : memref<1x!tpu.dma_semaphore, #tpu.memory_space<semaphore_mem>> -> memref<!tpu.dma_semaphore, #tpu.memory_space<semaphore_mem>>
    tpu.enqueue_dma source(%4 : memref<8x128xf32, #tpu.memory_space<any>>) target(%6 : memref<8x128xf32, #tpu.memory_space<any>>) target_semaphore(%8 : memref<!tpu.dma_semaphore, #tpu.memory_space<semaphore_mem>>)
    %c1_i32 = arith.constant 1 : i32
    %c1_i32_5 = arith.constant 1 : i32
    %c1_i32_6 = arith.constant 1 : i32
    %c0_i32_7 = arith.constant 0 : i32
    %c0_i32_8 = arith.constant 0 : i32
    %9 = tpu.memref_slice %arg2[%c1_i32, %c0_i32_7, %c0_i32_8] : memref<2x8x128xf32, #tpu.memory_space<any>> -> memref<1x8x128xf32, #tpu.memory_space<any>>
    %10 = tpu.memref_squeeze %9 : memref<1x8x128xf32, #tpu.memory_space<any>> -> memref<8x128xf32, #tpu.memory_space<any>>
    %c0_i32_9 = arith.constant 0 : i32
    %11 = tpu.memref_slice %arg4[%c1_i32_5, %2, %c0_i32_9] : memref<2x64x128xf32, #tpu.memory_space<any>> -> memref<1x8x128xf32, #tpu.memory_space<any>>
    %12 = tpu.memref_squeeze %11 : memref<1x8x128xf32, #tpu.memory_space<any>> -> memref<8x128xf32, #tpu.memory_space<any>>
    %13 = tpu.memref_slice %arg5[%c1_i32_6] : memref<2x!tpu.dma_semaphore, #tpu.memory_space<semaphore_mem>> -> memref<1x!tpu.dma_semaphore, #tpu.memory_space<semaphore_mem>>
    %14 = tpu.memref_squeeze %13 : memref<1x!tpu.dma_semaphore, #tpu.memory_space<semaphore_mem>> -> memref<!tpu.dma_semaphore, #tpu.memory_space<semaphore_mem>>
    tpu.enqueue_dma source(%10 : memref<8x128xf32, #tpu.memory_space<any>>) target(%12 : memref<8x128xf32, #tpu.memory_space<any>>) target_semaphore(%14 : memref<!tpu.dma_semaphore, #tpu.memory_space<semaphore_mem>>)
    %c0_i32_10 = arith.constant 0 : i32
    %c0_i32_11 = arith.constant 0 : i32
    %c0_i32_12 = arith.constant 0 : i32
    %c0_i32_13 = arith.constant 0 : i32
    %c0_i32_14 = arith.constant 0 : i32
    %15 = tpu.memref_slice %arg2[%c0_i32_10, %c0_i32_13, %c0_i32_14] : memref<2x8x128xf32, #tpu.memory_space<any>> -> memref<1x8x128xf32, #tpu.memory_space<any>>
    %16 = tpu.memref_squeeze %15 : memref<1x8x128xf32, #tpu.memory_space<any>> -> memref<8x128xf32, #tpu.memory_space<any>>
    %c0_i32_15 = arith.constant 0 : i32
    %17 = tpu.memref_slice %arg4[%c0_i32_11, %2, %c0_i32_15] : memref<2x64x128xf32, #tpu.memory_space<any>> -> memref<1x8x128xf32, #tpu.memory_space<any>>
    %18 = tpu.memref_squeeze %17 : memref<1x8x128xf32, #tpu.memory_space<any>> -> memref<8x128xf32, #tpu.memory_space<any>>
    %19 = tpu.memref_slice %arg5[%c0_i32_12] : memref<2x!tpu.dma_semaphore, #tpu.memory_space<semaphore_mem>> -> memref<1x!tpu.dma_semaphore, #tpu.memory_space<semaphore_mem>>
    %20 = tpu.memref_squeeze %19 : memref<1x!tpu.dma_semaphore, #tpu.memory_space<semaphore_mem>> -> memref<!tpu.dma_semaphore, #tpu.memory_space<semaphore_mem>>
    tpu.wait_dma2 semaphore(%20 : memref<!tpu.dma_semaphore, #tpu.memory_space<semaphore_mem>>) src(%16 : memref<8x128xf32, #tpu.memory_space<any>>) dst(%18 : memref<8x128xf32, #tpu.memory_space<any>>)
    %c1_i32_16 = arith.constant 1 : i32
    %c1_i32_17 = arith.constant 1 : i32
    %c1_i32_18 = arith.constant 1 : i32
    %c0_i32_19 = arith.constant 0 : i32
    %c0_i32_20 = arith.constant 0 : i32
    %21 = tpu.memref_slice %arg2[%c1_i32_16, %c0_i32_19, %c0_i32_20] : memref<2x8x128xf32, #tpu.memory_space<any>> -> memref<1x8x128xf32, #tpu.memory_space<any>>
    %22 = tpu.memref_squeeze %21 : memref<1x8x128xf32, #tpu.memory_space<any>> -> memref<8x128xf32, #tpu.memory_space<any>>
    %c0_i32_21 = arith.constant 0 : i32
    %23 = tpu.memref_slice %arg4[%c1_i32_17, %2, %c0_i32_21] : memref<2x64x128xf32, #tpu.memory_space<any>> -> memref<1x8x128xf32, #tpu.memory_space<any>>
    %24 = tpu.memref_squeeze %23 : memref<1x8x128xf32, #tpu.memory_space<any>> -> memref<8x128xf32, #tpu.memory_space<any>>
    %25 = tpu.memref_slice %arg5[%c1_i32_18] : memref<2x!tpu.dma_semaphore, #tpu.memory_space<semaphore_mem>> -> memref<1x!tpu.dma_semaphore, #tpu.memory_space<semaphore_mem>>
    %26 = tpu.memref_squeeze %25 : memref<1x!tpu.dma_semaphore, #tpu.memory_space<semaphore_mem>> -> memref<!tpu.dma_semaphore, #tpu.memory_space<semaphore_mem>>
    tpu.wait_dma2 semaphore(%26 : memref<!tpu.dma_semaphore, #tpu.memory_space<semaphore_mem>>) src(%22 : memref<8x128xf32, #tpu.memory_space<any>>) dst(%24 : memref<8x128xf32, #tpu.memory_space<any>>)
    return
  }
}

</mosaic_0001>

<bundles_post_ra>
// kernel: append_vectors.1
= control target key start
LH: loop header
LB: loop body
LE: loop exit
PB: predicated region body
PF: predicated region fallthrough
CT: control target
= control target key end

     0   :  { %s85_s21 = smov [#allocation2]   ;;  %s86_s22 = smov [#allocation5]   ;;  %s122_s0 = inlined_call_operand.<no memory space> [shape: s32[1], index: 0, kind: input, shape index: {}]   ;;  %s123_s1 = inlined_call_operand.hbm [shape: f32[2,8,128], index: 1, kind: input, shape index: {}]   ;;  %s124_s2 = inlined_call_operand.hbm [shape: f32[2,64,128], index: 2, kind: input, shape index: {}, may-alias: {2,3}]   ;;  %s125_s3 = inlined_call_operand.hbm [shape: f32[2,64,128], index: 3, kind: output, shape index: {}, may-alias: {2,3}]  }
   0x1   :  { %s74_s14 = sshll.u32 %s122_s0, 7  ;;  %s26_s20 = scalar_lea.hbm %s123_s1, 128 }
   0x2   :  { %s12_s17 = scalar_lea.hbm %s125_s3, %s74_s14  ;;  %s87_s23 = smov 0  }
   0x3   :  { %25 = dma.general %s123_s1, 128, %s12_s17, %s85_s21, %s86_s22, [#allocation6], %s87_s23, 0  }
   0x4   :  { %s67_s25 = scalar_lea.hbm %s12_s17, 1024  ;;  %s88_s26 = smov [#allocation2 + $0x1]  }
   0x5   :  { %s89_s27 = smov [#allocation7]  }
   0x6   :  { %43 = dma.general %s26_s20, 128, %s67_s25, %s88_s26, %s89_s27, [#allocation8], %s87_s23, 0  }
   0x7   :  { %81 = dma.done.wait [#allocation2], 128 }
   0x8   :  { %82 = vsyncadd [#allocation2], 4294967168 }
   0x9   :  { %83 = dma.done.wait [#allocation2 + $0x1], 128 }
   0xa   :  { %84 = vsyncadd [#allocation2 + $0x1], 4294967168 }
   0xb   :  { %49 = vsyncmov [#allocation2] }
   0xe   :  { %s50_s0 = vpop.sfrf %49 }
   0xf   :  { %p72_p0 = scmp.ne.s32.totalorder %s50_s0, 0 }
  0x11   :  { %54 = shalt.err (%p72_p0)  }
  0x12   :  { %56 = vsyncmov [#allocation2 + $0x1] }
  0x15   :  { %s57_s3 = vpop.sfrf %56 }
  0x16   :  { %p73_p1 = scmp.ne.s32.totalorder %s57_s3, 0 }
  0x18   :  { %61 = shalt.err (%p73_p1)  }

</bundles_post_ra>
